<compile_context>
chip_gen: v7x
topology: tpu7x:2x2x1
jax: 0.10.0
libtpu: 0.0.40
codegen_flags: <defaults>
</compile_context>

<pallas_src>
import jax
import jax.numpy as jnp
from jax.experimental import pallas as pl
from jax.experimental.pallas import tpu as pltpu


# ---------------------------------------------------------------------------
# Fused kernel
# ---------------------------------------------------------------------------

def _make_fused_kernel(n_layers1, n_layers2, latent_dims):
    k = latent_dims

    def kernel(*refs):
        it = iter(refs)
        xx1_ref = next(it)
        xx2_ref = next(it)
        fc1 = [(next(it), next(it)) for _ in range(n_layers1)]
        fc2 = [(next(it), next(it)) for _ in range(n_layers2)]
        wh1_ref, bh1_ref = next(it), next(it)   # concat [mean | lnvar] head, branch 1
        wh2_ref, bh2_ref = next(it), next(it)   # concat [mean | lnvar] head, branch 2
        eps1_ref, eps2_ref = next(it), next(it)
        beta_ref = next(it)                     # (k, d1+d2) bf16, precomputed in wrapper
        scale_ref = next(it)                    # (1, d1+d2) f32: exp(lmbda) per column
        stats_ref = next(it)                    # (nb, 5k): [mm1|lv1|mm2|lv2|theta]
        alpha_ref = next(it)                    # (nb, d1+d2): lane-dense alpha slab

        # ---------------- encoder: log1p + (Linear + ReLU)* ----------------
        # TODO(synk): at vocab-scale d1/d2 the first-layer weight should be
        # K-tiled (extra "arbitrary" grid axis / emit_pipeline) instead of one
        # replicated block; at demo sizes the full weight fits VMEM.
        def mlp(x_ref, layers):
            s = jnp.log1p(x_ref[...])
            for w_ref, b_ref in layers:
                s = jnp.maximum(
                    jnp.dot(s.astype(jnp.bfloat16), w_ref[...],
                            preferred_element_type=jnp.float32) + b_ref[...],
                    0.0)
            return s

        ss1 = mlp(xx1_ref, fc1)
        ss2 = mlp(xx2_ref, fc2)

        # ----- fused mean/lnvar heads: one [k, 2k] matmul per branch -----
        # TODO(synk): if latent_dims grows toward 128, pad the fused head so the
        # mean / lnvar segments start on 128-lane boundaries (vreg-aligned slices).
        h1 = jnp.dot(ss1.astype(jnp.bfloat16), wh1_ref[...],
                     preferred_element_type=jnp.float32) + bh1_ref[...]
        h2 = jnp.dot(ss2.astype(jnp.bfloat16), wh2_ref[...],
                     preferred_element_type=jnp.float32) + bh2_ref[...]
        mm1 = h1[:, :k]
        lv1 = jnp.clip(h1[:, k:], -4.0, 4.0)
        mm2 = h2[:, :k]
        lv2 = jnp.clip(h2[:, k:], -4.0, 4.0)

        # reparameterize (z = mean + exp(0.5*lnvar)*eps) and average
        z1 = mm1 + jnp.exp(0.5 * lv1) * eps1_ref[...]
        z2 = mm2 + jnp.exp(0.5 * lv2) * eps2_ref[...]
        zz = 0.5 * (z1 + z2)

        # ---------------- decoder ----------------
        # theta = exp(log_softmax(zz)) == softmax(zz); approx reciprocal -> EUP slot.
        p = jnp.exp(zz - jnp.max(zz, axis=-1, keepdims=True))
        theta = p * pl.reciprocal(jnp.sum(p, axis=-1, keepdims=True), approx=True)

        s = jnp.dot(theta.astype(jnp.bfloat16), beta_ref[...],
                    preferred_element_type=jnp.float32)       # (nb, d1+d2)
        alpha_ref[...] = scale_ref[...] * jnp.exp(jnp.clip(s, -10.0, 10.0))

        # small stats slab via direct slice stores (no in-kernel concat copies)
        stats_ref[:, 0 * k:1 * k] = mm1
        stats_ref[:, 1 * k:2 * k] = lv1
        stats_ref[:, 2 * k:3 * k] = mm2
        stats_ref[:, 3 * k:4 * k] = lv2
        stats_ref[:, 4 * k:5 * k] = theta

    return kernel


# ---------------------------------------------------------------------------
# Parameter construction (deterministic, synthetic)
# ---------------------------------------------------------------------------

def _linear_params(key, din, dout):
    kw, kb = jax.random.split(key)
    scale = 1.0 / jnp.sqrt(jnp.float32(din))
    w = jax.random.normal(kw, (din, dout), jnp.float32) * scale
    b = jax.random.normal(kb, (1, dout), jnp.float32) * scale
    return w, b


def init_etm_params(key, input_dims1, input_dims2, latent_dims, layers1, layers2,
                    jitter=0.1):
    keys = iter(jax.random.split(key, 32))
    p = {}

    # Stacklayers: Linear + ReLU per entry; the BatchNorm1d constructed in the
    # reference __init__ is never appended to self.layers, so it is a no-op.
    def stack(din, layers):
        out = []
        for nxt in layers:
            out.append(_linear_params(next(keys), din, nxt))
            din = nxt
        return out

    p["fc1"] = stack(input_dims1, layers1)
    p["fc2"] = stack(input_dims2, layers2)
    p["z1_mean"] = _linear_params(next(keys), latent_dims, latent_dims)
    p["z1_lnvar"] = _linear_params(next(keys), latent_dims, latent_dims)
    p["z2_mean"] = _linear_params(next(keys), latent_dims, latent_dims)
    p["z2_lnvar"] = _linear_params(next(keys), latent_dims, latent_dims)

    p["p_beta_l_mean"] = jax.random.normal(next(keys), (latent_dims, input_dims1)) * jitter
    p["p_beta_r_mean"] = jax.random.normal(next(keys), (latent_dims, input_dims2)) * jitter
    p["p_beta_l_lnvar"] = jnp.zeros((latent_dims, input_dims1), jnp.float32)
    p["p_beta_r_lnvar"] = jnp.zeros((latent_dims, input_dims2), jnp.float32)
    p["p_beta_l_bias"] = jax.random.normal(next(keys), (1, input_dims1)) * jitter
    p["p_beta_r_bias"] = jax.random.normal(next(keys), (1, input_dims2)) * jitter
    p["lmbda_l"] = jax.random.normal(next(keys), (1,)) * jitter
    p["lmbda_r"] = jax.random.normal(next(keys), (1,)) * jitter
    return p


# ---------------------------------------------------------------------------
# Forward pass (single pallas_call)
# ---------------------------------------------------------------------------

def etm_forward(params, xx1, xx2, rng_key):
    n, d1 = xx1.shape
    d2 = xx2.shape[1]
    k = params["z1_mean"][0].shape[1]
    D = d1 + d2
    bf16 = jnp.bfloat16

    k1, k2, k3, k4 = jax.random.split(rng_key, 4)
    # TODO(synk): reparameterization noise uses the JAX PRNG (stream differs from
    # torch); generating it in-kernel (pltpu.prng_seed + stateful_normal) would
    # drop these small inputs but change the stream again.
    eps1 = jax.random.normal(k1, (n, k), jnp.float32)
    eps2 = jax.random.normal(k2, (n, k), jnp.float32)
    eps_bl = jax.random.normal(k3, params["p_beta_l_mean"].shape, jnp.float32)
    eps_br = jax.random.normal(k4, params["p_beta_r_mean"].shape, jnp.float32)

    # ---- batch-invariant preprocessing in plain JAX (runs once, not per tile) ----
    # fused mean/lnvar heads -> one [k, 2k] weight per branch
    wh1 = jnp.concatenate([params["z1_mean"][0], params["z1_lnvar"][0]], axis=1)
    bh1 = jnp.concatenate([params["z1_mean"][1], params["z1_lnvar"][1]], axis=1)
    wh2 = jnp.concatenate([params["z2_mean"][0], params["z2_lnvar"][0]], axis=1)
    bh2 = jnp.concatenate([params["z2_mean"][1], params["z2_lnvar"][1]], axis=1)

    # beta is batch-invariant: reparameterize + bias once here (kernel gets one
    # (k, d1+d2) bf16 operand instead of 3x (k, D) f32 recomputed per grid step).
    def _beta(mean, lnvar, eps, bias):
        return mean + jnp.exp(0.5 * jnp.clip(lnvar, -5.0, 5.0)) * eps + bias

    beta = jnp.concatenate(
        [_beta(params["p_beta_l_mean"], params["p_beta_l_lnvar"], eps_bl,
               params["p_beta_l_bias"]),
         _beta(params["p_beta_r_mean"], params["p_beta_r_lnvar"], eps_br,
               params["p_beta_r_bias"])], axis=1)

    scale = jnp.concatenate(
        [jnp.broadcast_to(jnp.exp(params["lmbda_l"]).reshape(1, 1), (1, d1)),
         jnp.broadcast_to(jnp.exp(params["lmbda_r"]).reshape(1, 1), (1, d2))],
        axis=1)

    # ---- batch tiling: big M tiles (256-row MXU on v6e/v7x), pad remainder ----
    nb = n if n <= 256 else 256
    n_pad = pl.cdiv(n, nb) * nb
    if n_pad != n:
        pad = ((0, n_pad - n), (0, 0))
        xx1 = jnp.pad(xx1, pad)
        xx2 = jnp.pad(xx2, pad)
        eps1 = jnp.pad(eps1, pad)
        eps2 = jnp.pad(eps2, pad)
    grid = (n_pad // nb,)

    in_specs = []
    operands = []
    rep_bytes = 0

    def add_batch(x, width):
        operands.append(x)
        in_specs.append(pl.BlockSpec((nb, width), lambda i: (i, 0)))

    def add_rep(x):
        nonlocal rep_bytes
        rep_bytes += x.size * x.dtype.itemsize
        operands.append(x)
        # grid-invariant operand: block index never changes -> single buffer.
        in_specs.append(pl.BlockSpec(x.shape, lambda i: (0, 0),
                                     pipeline_mode=pl.Buffered(1)))

    add_batch(xx1, d1)
    add_batch(xx2, d2)
    for w, b in params["fc1"]:
        add_rep(w.astype(bf16))
        add_rep(b)
    for w, b in params["fc2"]:
        add_rep(w.astype(bf16))
        add_rep(b)
    add_rep(wh1.astype(bf16))
    add_rep(bh1)
    add_rep(wh2.astype(bf16))
    add_rep(bh2)
    add_batch(eps1, k)
    add_batch(eps2, k)
    add_rep(beta.astype(bf16))
    add_rep(scale)

    # VMEM budget: double-buffered batch tiles + single-buffered replicated
    # operands, with headroom; capped to v7x's 64 MiB physical VMEM.
    batch_bytes = 4 * nb * (d1 + d2 + 2 * k)      # streamed inputs (f32)
    out_bytes = 4 * nb * (5 * k + D)              # streamed outputs (f32)
    vmem_budget = 2 * (batch_bytes + out_bytes) + rep_bytes
    vmem_limit = int(min(max(2 * vmem_budget + (8 << 20), 32 << 20), 64 << 20))

    kernel = _make_fused_kernel(len(params["fc1"]), len(params["fc2"]), k)

    stats, alpha = pl.pallas_call(
        kernel,
        out_shape=(jax.ShapeDtypeStruct((n_pad, 5 * k), jnp.float32),
                   jax.ShapeDtypeStruct((n_pad, D), jnp.float32)),
        grid=grid,
        in_specs=in_specs,
        out_specs=(pl.BlockSpec((nb, 5 * k), lambda i: (i, 0)),
                   pl.BlockSpec((nb, D), lambda i: (i, 0))),
        compiler_params=pltpu.CompilerParams(
            dimension_semantics=("parallel",),
            vmem_limit_bytes=vmem_limit),
    )(*operands)

    stats = stats[:n]
    alpha = alpha[:n]

    mm1 = stats[:, 0:k]
    lv1 = stats[:, k:2 * k]
    mm2 = stats[:, 2 * k:3 * k]
    lv2 = stats[:, 3 * k:4 * k]
    theta = stats[:, 4 * k:5 * k]
    alpha_l = alpha[:, :d1]
    alpha_r = alpha[:, d1:]

    return (mm1, lv1, mm2, lv2,
            params["p_beta_l_mean"], params["p_beta_l_lnvar"],
            params["p_beta_r_mean"], params["p_beta_r_lnvar"],
            theta, alpha_l, alpha_r)


# ---------------------------------------------------------------------------
# Pure-JAX f32 reference (same math / same noise) for correctness check
# ---------------------------------------------------------------------------

def etm_forward_ref(params, xx1, xx2, rng_key):
    n = xx1.shape[0]
    k = params["z1_mean"][0].shape[1]
    k1, k2, k3, k4 = jax.random.split(rng_key, 4)
    eps1 = jax.random.normal(k1, (n, k), jnp.float32)
    eps2 = jax.random.normal(k2, (n, k), jnp.float32)
    eps_bl = jax.random.normal(k3, params["p_beta_l_mean"].shape, jnp.float32)
    eps_br = jax.random.normal(k4, params["p_beta_r_mean"].shape, jnp.float32)

    def stack(x, layers):
        for w, b in layers:
            x = jnp.maximum(x @ w + b, 0.0)
        return x

    ss1 = stack(jnp.log1p(xx1), params["fc1"])
    ss2 = stack(jnp.log1p(xx2), params["fc2"])
    mm1 = ss1 @ params["z1_mean"][0] + params["z1_mean"][1]
    lv1 = jnp.clip(ss1 @ params["z1_lnvar"][0] + params["z1_lnvar"][1], -4.0, 4.0)
    mm2 = ss2 @ params["z2_mean"][0] + params["z2_mean"][1]
    lv2 = jnp.clip(ss2 @ params["z2_lnvar"][0] + params["z2_lnvar"][1], -4.0, 4.0)
    z1 = mm1 + jnp.exp(0.5 * lv1) * eps1
    z2 = mm2 + jnp.exp(0.5 * lv2) * eps2
    zz = 0.5 * (z1 + z2)
    theta = jax.nn.softmax(zz, axis=-1)
    beta_l = (params["p_beta_l_mean"]
              + jnp.exp(0.5 * jnp.clip(params["p_beta_l_lnvar"], -5.0, 5.0)) * eps_bl
              + params["p_beta_l_bias"])
    beta_r = (params["p_beta_r_mean"]
              + jnp.exp(0.5 * jnp.clip(params["p_beta_r_lnvar"], -5.0, 5.0)) * eps_br
              + params["p_beta_r_bias"])
    alpha_l = jnp.exp(params["lmbda_l"]) * jnp.exp(jnp.clip(theta @ beta_l, -10.0, 10.0))
    alpha_r = jnp.exp(params["lmbda_r"]) * jnp.exp(jnp.clip(theta @ beta_r, -10.0, 10.0))
    return mm1, lv1, mm2, lv2, theta, alpha_l, alpha_r


# ---------------------------------------------------------------------------
# Demo
# ---------------------------------------------------------------------------

if __name__ == "__main__":
    key = jax.random.PRNGKey(0)
    k_param, k_x1, k_x2, k_noise = jax.random.split(key, 4)

    batch = 8
    input_dims1, input_dims2 = 64, 48
    latent_dims = 16
    layers1 = [32, latent_dims]
    layers2 = [32, latent_dims]

    params = init_etm_params(k_param, input_dims1, input_dims2, latent_dims,
                             layers1, layers2)

    # count-like non-negative inputs (log1p is applied inside the kernel)
    xx1 = jax.random.uniform(k_x1, (batch, input_dims1), jnp.float32) * 5.0
    xx2 = jax.random.uniform(k_x2, (batch, input_dims2), jnp.float32) * 5.0

    fwd = jax.jit(etm_forward)
    outs = fwd(params, xx1, xx2, k_noise)
    outs = jax.block_until_ready(outs)

    m1, v1, m2, v2, blm, blv, brm, brv, theta, alpha_l, alpha_r = outs

    # structural sanity
    assert m1.shape == (batch, latent_dims) and v1.shape == (batch, latent_dims)
    assert theta.shape == (batch, latent_dims)
    assert alpha_l.shape == (batch, input_dims1)
    assert alpha_r.shape == (batch, input_dims2)
    assert bool(jnp.all(jnp.isfinite(theta)))
    # approx reciprocal in the softmax -> row sums within ~1e-3 of 1
    assert bool(jnp.allclose(jnp.sum(theta, axis=-1), 1.0, atol=1e-2))
    assert bool(jnp.all(alpha_l > 0)) and bool(jnp.all(alpha_r > 0))
    assert bool(jnp.all(v1 >= -4.0)) and bool(jnp.all(v1 <= 4.0))

    # numerical check vs. pure-f32 JAX reference (kernel uses bf16 matmul
    # operands with f32 accumulation + approx reciprocal, so tolerance is loose)
    rm1, rv1, rm2, rv2, rtheta, ral, rar = etm_forward_ref(params, xx1, xx2, k_noise)
    for got, ref in [(m1, rm1), (v1, rv1), (m2, rm2), (v2, rv2),
                     (theta, rtheta), (alpha_l, ral), (alpha_r, rar)]:
        assert bool(jnp.allclose(got, ref, rtol=5e-2, atol=5e-2)), "mismatch vs reference"

    print("KERNEL_OK")
</pallas_src>

<mosaic_0001>
module attributes {stable_mosaic.version = 11 : i64} {
  func.func @kernel(%arg0: i32, %arg1: memref<8x64xf32, #tpu.memory_space<vmem>>, %arg2: memref<8x48xf32, #tpu.memory_space<vmem>>, %arg3: memref<64x32xbf16, #tpu.memory_space<vmem>>, %arg4: memref<1x32xf32, #tpu.memory_space<vmem>>, %arg5: memref<32x16xbf16, #tpu.memory_space<vmem>>, %arg6: memref<1x16xf32, #tpu.memory_space<vmem>>, %arg7: memref<48x32xbf16, #tpu.memory_space<vmem>>, %arg8: memref<1x32xf32, #tpu.memory_space<vmem>>, %arg9: memref<32x16xbf16, #tpu.memory_space<vmem>>, %arg10: memref<1x16xf32, #tpu.memory_space<vmem>>, %arg11: memref<16x32xbf16, #tpu.memory_space<vmem>>, %arg12: memref<1x32xf32, #tpu.memory_space<vmem>>, %arg13: memref<16x32xbf16, #tpu.memory_space<vmem>>, %arg14: memref<1x32xf32, #tpu.memory_space<vmem>>, %arg15: memref<8x16xf32, #tpu.memory_space<vmem>>, %arg16: memref<8x16xf32, #tpu.memory_space<vmem>>, %arg17: memref<16x112xbf16, #tpu.memory_space<vmem>>, %arg18: memref<1x112xf32, #tpu.memory_space<vmem>>, %arg19: memref<8x80xf32, #tpu.memory_space<vmem>>, %arg20: memref<8x112xf32, #tpu.memory_space<vmem>>) attributes {dimension_semantics = [#tpu.dimension_semantics<parallel>], iteration_bounds = array<i64: 1>, scalar_prefetch = 0 : i64, scratch_operands = 0 : i64, tpu.core_type = #tpu.core_type<tc>, window_params = [{transform_indices = @transform_0, window_bounds = array<i64: 8, 64>}, {transform_indices = @transform_1, window_bounds = array<i64: 8, 48>}, {pipeline_mode = #tpu.pipeline_mode<synchronous>, transform_indices = @transform_2, window_bounds = array<i64: 64, 32>}, {pipeline_mode = #tpu.pipeline_mode<synchronous>, transform_indices = @transform_3, window_bounds = array<i64: 1, 32>}, {pipeline_mode = #tpu.pipeline_mode<synchronous>, transform_indices = @transform_4, window_bounds = array<i64: 32, 16>}, {pipeline_mode = #tpu.pipeline_mode<synchronous>, transform_indices = @transform_5, window_bounds = array<i64: 1, 16>}, {pipeline_mode = #tpu.pipeline_mode<synchronous>, transform_indices = @transform_6, window_bounds = array<i64: 48, 32>}, {pipeline_mode = #tpu.pipeline_mode<synchronous>, transform_indices = @transform_7, window_bounds = array<i64: 1, 32>}, {pipeline_mode = #tpu.pipeline_mode<synchronous>, transform_indices = @transform_8, window_bounds = array<i64: 32, 16>}, {pipeline_mode = #tpu.pipeline_mode<synchronous>, transform_indices = @transform_9, window_bounds = array<i64: 1, 16>}, {pipeline_mode = #tpu.pipeline_mode<synchronous>, transform_indices = @transform_10, window_bounds = array<i64: 16, 32>}, {pipeline_mode = #tpu.pipeline_mode<synchronous>, transform_indices = @transform_11, window_bounds = array<i64: 1, 32>}, {pipeline_mode = #tpu.pipeline_mode<synchronous>, transform_indices = @transform_12, window_bounds = array<i64: 16, 32>}, {pipeline_mode = #tpu.pipeline_mode<synchronous>, transform_indices = @transform_13, window_bounds = array<i64: 1, 32>}, {transform_indices = @transform_14, window_bounds = array<i64: 8, 16>}, {transform_indices = @transform_15, window_bounds = array<i64: 8, 16>}, {pipeline_mode = #tpu.pipeline_mode<synchronous>, transform_indices = @transform_16, window_bounds = array<i64: 16, 112>}, {pipeline_mode = #tpu.pipeline_mode<synchronous>, transform_indices = @transform_17, window_bounds = array<i64: 1, 112>}, {transform_indices = @transform_18, window_bounds = array<i64: 8, 80>}, {transform_indices = @transform_19, window_bounds = array<i64: 8, 112>}]} {
    %c0 = arith.constant 0 : index
    %c0_0 = arith.constant 0 : index
    %0 = vector.load %arg1[%c0, %c0_0] : memref<8x64xf32, #tpu.memory_space<vmem>>, vector<8x64xf32>
    %1 = math.log1p %0 : vector<8x64xf32>
    %2 = arith.truncf %1 : vector<8x64xf32> to vector<8x64xbf16>
    %c0_1 = arith.constant 0 : index
    %c0_2 = arith.constant 0 : index
    %3 = vector.load %arg3[%c0_1, %c0_2] : memref<64x32xbf16, #tpu.memory_space<vmem>>, vector<64x32xbf16>
    %cst = arith.constant dense<0.000000e+00> : vector<8x32xf32>
    %4 = tpu.matmul %2, %3, %cst {dimension_numbers = #tpu.dot_dimension_numbers<[1], [0], [0], [1], [0, 0, 1, 1], [], []>} : vector<8x64xbf16>, vector<64x32xbf16>, vector<8x32xf32> -> vector<8x32xf32>
    %c0_3 = arith.constant 0 : index
    %c0_4 = arith.constant 0 : index
    %5 = vector.load %arg4[%c0_3, %c0_4] : memref<1x32xf32, #tpu.memory_space<vmem>>, vector<1x32xf32>
    %6 = vector.broadcast %5 : vector<1x32xf32> to vector<8x32xf32>
    %7 = arith.addf %4, %6 : vector<8x32xf32>
    %cst_5 = arith.constant 0.000000e+00 : f32
    %8 = vector.broadcast %cst_5 : f32 to vector<8x32xf32>
    %9 = arith.maximumf %7, %8 : vector<8x32xf32>
    %10 = arith.truncf %9 : vector<8x32xf32> to vector<8x32xbf16>
    %c0_6 = arith.constant 0 : index
    %c0_7 = arith.constant 0 : index
    %11 = vector.load %arg5[%c0_6, %c0_7] : memref<32x16xbf16, #tpu.memory_space<vmem>>, vector<32x16xbf16>
    %cst_8 = arith.constant dense<0.000000e+00> : vector<8x16xf32>
    %12 = tpu.matmul %10, %11, %cst_8 {dimension_numbers = #tpu.dot_dimension_numbers<[1], [0], [0], [1], [0, 0, 1, 1], [], []>} : vector<8x32xbf16>, vector<32x16xbf16>, vector<8x16xf32> -> vector<8x16xf32>
    %c0_9 = arith.constant 0 : index
    %c0_10 = arith.constant 0 : index
    %13 = vector.load %arg6[%c0_9, %c0_10] : memref<1x16xf32, #tpu.memory_space<vmem>>, vector<1x16xf32>
    %14 = vector.broadcast %13 : vector<1x16xf32> to vector<8x16xf32>
    %15 = arith.addf %12, %14 : vector<8x16xf32>
    %cst_11 = arith.constant 0.000000e+00 : f32
    %16 = vector.broadcast %cst_11 : f32 to vector<8x16xf32>
    %17 = arith.maximumf %15, %16 : vector<8x16xf32>
    %c0_12 = arith.constant 0 : index
    %c0_13 = arith.constant 0 : index
    %18 = vector.load %arg2[%c0_12, %c0_13] : memref<8x48xf32, #tpu.memory_space<vmem>>, vector<8x48xf32>
    %19 = math.log1p %18 : vector<8x48xf32>
    %20 = arith.truncf %19 : vector<8x48xf32> to vector<8x48xbf16>
    %c0_14 = arith.constant 0 : index
    %c0_15 = arith.constant 0 : index
    %21 = vector.load %arg7[%c0_14, %c0_15] : memref<48x32xbf16, #tpu.memory_space<vmem>>, vector<48x32xbf16>
    %cst_16 = arith.constant dense<0.000000e+00> : vector<8x32xf32>
    %22 = tpu.matmul %20, %21, %cst_16 {dimension_numbers = #tpu.dot_dimension_numbers<[1], [0], [0], [1], [0, 0, 1, 1], [], []>} : vector<8x48xbf16>, vector<48x32xbf16>, vector<8x32xf32> -> vector<8x32xf32>
    %c0_17 = arith.constant 0 : index
    %c0_18 = arith.constant 0 : index
    %23 = vector.load %arg8[%c0_17, %c0_18] : memref<1x32xf32, #tpu.memory_space<vmem>>, vector<1x32xf32>
    %24 = vector.broadcast %23 : vector<1x32xf32> to vector<8x32xf32>
    %25 = arith.addf %22, %24 : vector<8x32xf32>
    %cst_19 = arith.constant 0.000000e+00 : f32
    %26 = vector.broadcast %cst_19 : f32 to vector<8x32xf32>
    %27 = arith.maximumf %25, %26 : vector<8x32xf32>
    %28 = arith.truncf %27 : vector<8x32xf32> to vector<8x32xbf16>
    %c0_20 = arith.constant 0 : index
    %c0_21 = arith.constant 0 : index
    %29 = vector.load %arg9[%c0_20, %c0_21] : memref<32x16xbf16, #tpu.memory_space<vmem>>, vector<32x16xbf16>
    %cst_22 = arith.constant dense<0.000000e+00> : vector<8x16xf32>
    %30 = tpu.matmul %28, %29, %cst_22 {dimension_numbers = #tpu.dot_dimension_numbers<[1], [0], [0], [1], [0, 0, 1, 1], [], []>} : vector<8x32xbf16>, vector<32x16xbf16>, vector<8x16xf32> -> vector<8x16xf32>
    %c0_23 = arith.constant 0 : index
    %c0_24 = arith.constant 0 : index
    %31 = vector.load %arg10[%c0_23, %c0_24] : memref<1x16xf32, #tpu.memory_space<vmem>>, vector<1x16xf32>
    %32 = vector.broadcast %31 : vector<1x16xf32> to vector<8x16xf32>
    %33 = arith.addf %30, %32 : vector<8x16xf32>
    %cst_25 = arith.constant 0.000000e+00 : f32
    %34 = vector.broadcast %cst_25 : f32 to vector<8x16xf32>
    %35 = arith.maximumf %33, %34 : vector<8x16xf32>
    %36 = arith.truncf %17 : vector<8x16xf32> to vector<8x16xbf16>
    %c0_26 = arith.constant 0 : index
    %c0_27 = arith.constant 0 : index
    %37 = vector.load %arg11[%c0_26, %c0_27] : memref<16x32xbf16, #tpu.memory_space<vmem>>, vector<16x32xbf16>
    %cst_28 = arith.constant dense<0.000000e+00> : vector<8x32xf32>
    %38 = tpu.matmul %36, %37, %cst_28 {dimension_numbers = #tpu.dot_dimension_numbers<[1], [0], [0], [1], [0, 0, 1, 1], [], []>} : vector<8x16xbf16>, vector<16x32xbf16>, vector<8x32xf32> -> vector<8x32xf32>
    %c0_29 = arith.constant 0 : index
    %c0_30 = arith.constant 0 : index
    %39 = vector.load %arg12[%c0_29, %c0_30] : memref<1x32xf32, #tpu.memory_space<vmem>>, vector<1x32xf32>
    %40 = vector.broadcast %39 : vector<1x32xf32> to vector<8x32xf32>
    %41 = arith.addf %38, %40 : vector<8x32xf32>
    %42 = arith.truncf %35 : vector<8x16xf32> to vector<8x16xbf16>
    %c0_31 = arith.constant 0 : index
    %c0_32 = arith.constant 0 : index
    %43 = vector.load %arg13[%c0_31, %c0_32] : memref<16x32xbf16, #tpu.memory_space<vmem>>, vector<16x32xbf16>
    %cst_33 = arith.constant dense<0.000000e+00> : vector<8x32xf32>
    %44 = tpu.matmul %42, %43, %cst_33 {dimension_numbers = #tpu.dot_dimension_numbers<[1], [0], [0], [1], [0, 0, 1, 1], [], []>} : vector<8x16xbf16>, vector<16x32xbf16>, vector<8x32xf32> -> vector<8x32xf32>
    %c0_34 = arith.constant 0 : index
    %c0_35 = arith.constant 0 : index
    %45 = vector.load %arg14[%c0_34, %c0_35] : memref<1x32xf32, #tpu.memory_space<vmem>>, vector<1x32xf32>
    %46 = vector.broadcast %45 : vector<1x32xf32> to vector<8x32xf32>
    %47 = arith.addf %44, %46 : vector<8x32xf32>
    %48 = vector.extract_strided_slice %41 {offsets = [0, 0], sizes = [8, 16], strides = [1, 1]} : vector<8x32xf32> to vector<8x16xf32>
    %49 = vector.extract_strided_slice %41 {offsets = [0, 16], sizes = [8, 16], strides = [1, 1]} : vector<8x32xf32> to vector<8x16xf32>
    %cst_36 = arith.constant -4.000000e+00 : f32
    %cst_37 = arith.constant 4.000000e+00 : f32
    %50 = vector.broadcast %cst_36 : f32 to vector<8x16xf32>
    %51 = arith.maximumf %50, %49 : vector<8x16xf32>
    %52 = vector.broadcast %cst_37 : f32 to vector<8x16xf32>
    %53 = arith.minimumf %52, %51 : vector<8x16xf32>
    %54 = vector.extract_strided_slice %47 {offsets = [0, 0], sizes = [8, 16], strides = [1, 1]} : vector<8x32xf32> to vector<8x16xf32>
    %55 = vector.extract_strided_slice %47 {offsets = [0, 16], sizes = [8, 16], strides = [1, 1]} : vector<8x32xf32> to vector<8x16xf32>
    %cst_38 = arith.constant -4.000000e+00 : f32
    %cst_39 = arith.constant 4.000000e+00 : f32
    %56 = vector.broadcast %cst_38 : f32 to vector<8x16xf32>
    %57 = arith.maximumf %56, %55 : vector<8x16xf32>
    %58 = vector.broadcast %cst_39 : f32 to vector<8x16xf32>
    %59 = arith.minimumf %58, %57 : vector<8x16xf32>
    %cst_40 = arith.constant 5.000000e-01 : f32
    %60 = vector.broadcast %cst_40 : f32 to vector<8x16xf32>
    %61 = arith.mulf %60, %53 : vector<8x16xf32>
    %62 = math.exp %61 : vector<8x16xf32>
    %c0_41 = arith.constant 0 : index
    %c0_42 = arith.constant 0 : index
    %63 = vector.load %arg15[%c0_41, %c0_42] : memref<8x16xf32, #tpu.memory_space<vmem>>, vector<8x16xf32>
    %64 = arith.mulf %62, %63 : vector<8x16xf32>
    %65 = arith.addf %48, %64 : vector<8x16xf32>
    %cst_43 = arith.constant 5.000000e-01 : f32
    %66 = vector.broadcast %cst_43 : f32 to vector<8x16xf32>
    %67 = arith.mulf %66, %59 : vector<8x16xf32>
    %68 = math.exp %67 : vector<8x16xf32>
    %c0_44 = arith.constant 0 : index
    %c0_45 = arith.constant 0 : index
    %69 = vector.load %arg16[%c0_44, %c0_45] : memref<8x16xf32, #tpu.memory_space<vmem>>, vector<8x16xf32>
    %70 = arith.mulf %68, %69 : vector<8x16xf32>
    %71 = arith.addf %54, %70 : vector<8x16xf32>
    %72 = arith.addf %65, %71 : vector<8x16xf32>
    %cst_46 = arith.constant 5.000000e-01 : f32
    %73 = vector.broadcast %cst_46 : f32 to vector<8x16xf32>
    %74 = arith.mulf %73, %72 : vector<8x16xf32>
    %cst_47 = arith.constant dense<0xFF800000> : vector<8xf32>
    %75 = vector.multi_reduction <maximumf>, %74, %cst_47 [1] : vector<8x16xf32> to vector<8xf32>
    %76 = vector.shape_cast %75 : vector<8xf32> to vector<8x1xf32>
    %77 = vector.broadcast %76 : vector<8x1xf32> to vector<8x16xf32>
    %78 = arith.subf %74, %77 : vector<8x16xf32>
    %79 = math.exp %78 : vector<8x16xf32>
    %cst_48 = arith.constant dense<0.000000e+00> : vector<8xf32>
    %80 = vector.multi_reduction <add>, %79, %cst_48 [1] : vector<8x16xf32> to vector<8xf32>
    %81 = vector.shape_cast %80 : vector<8xf32> to vector<8x1xf32>
    %82 = tpu.reciprocal %81 {approx = true} : vector<8x1xf32> -> vector<8x1xf32>
    %83 = vector.broadcast %82 : vector<8x1xf32> to vector<8x16xf32>
    %84 = arith.mulf %79, %83 : vector<8x16xf32>
    %85 = arith.truncf %84 : vector<8x16xf32> to vector<8x16xbf16>
    %c0_49 = arith.constant 0 : index
    %c0_50 = arith.constant 0 : index
    %86 = vector.load %arg17[%c0_49, %c0_50] : memref<16x112xbf16, #tpu.memory_space<vmem>>, vector<16x112xbf16>
    %cst_51 = arith.constant dense<0.000000e+00> : vector<8x112xf32>
    %87 = tpu.matmul %85, %86, %cst_51 {dimension_numbers = #tpu.dot_dimension_numbers<[1], [0], [0], [1], [0, 0, 1, 1], [], []>} : vector<8x16xbf16>, vector<16x112xbf16>, vector<8x112xf32> -> vector<8x112xf32>
    %c0_52 = arith.constant 0 : index
    %c0_53 = arith.constant 0 : index
    %88 = vector.load %arg18[%c0_52, %c0_53] : memref<1x112xf32, #tpu.memory_space<vmem>>, vector<1x112xf32>
    %cst_54 = arith.constant -1.000000e+01 : f32
    %cst_55 = arith.constant 1.000000e+01 : f32
    %89 = vector.broadcast %cst_54 : f32 to vector<8x112xf32>
    %90 = arith.maximumf %89, %87 : vector<8x112xf32>
    %91 = vector.broadcast %cst_55 : f32 to vector<8x112xf32>
    %92 = arith.minimumf %91, %90 : vector<8x112xf32>
    %93 = math.exp %92 : vector<8x112xf32>
    %94 = vector.broadcast %88 : vector<1x112xf32> to vector<8x112xf32>
    %95 = arith.mulf %94, %93 : vector<8x112xf32>
    %c0_56 = arith.constant 0 : index
    %c0_57 = arith.constant 0 : index
    %96 = vector.load %arg20[%c0_56, %c0_57] : memref<8x112xf32, #tpu.memory_space<vmem>>, vector<8x112xf32>
    tpu.vector_store %arg20[%c0_56, %c0_57], %95 {strides = array<i32>} : memref<8x112xf32, #tpu.memory_space<vmem>>, vector<8x112xf32>,
    %c0_58 = arith.constant 0 : index
    %c0_59 = arith.constant 0 : index
    %97 = vector.load %arg19[%c0_58, %c0_59] : memref<8x80xf32, #tpu.memory_space<vmem>>, vector<8x16xf32>
    tpu.vector_store %arg19[%c0_58, %c0_59], %48 {strides = array<i32>} : memref<8x80xf32, #tpu.memory_space<vmem>>, vector<8x16xf32>,
    %c0_60 = arith.constant 0 : index
    %c16 = arith.constant 16 : index
    %98 = vector.load %arg19[%c0_60, %c16] : memref<8x80xf32, #tpu.memory_space<vmem>>, vector<8x16xf32>
    tpu.vector_store %arg19[%c0_60, %c16], %53 {strides = array<i32>} : memref<8x80xf32, #tpu.memory_space<vmem>>, vector<8x16xf32>,
    %c0_61 = arith.constant 0 : index
    %c32 = arith.constant 32 : index
    %99 = vector.load %arg19[%c0_61, %c32] : memref<8x80xf32, #tpu.memory_space<vmem>>, vector<8x16xf32>
    tpu.vector_store %arg19[%c0_61, %c32], %54 {strides = array<i32>} : memref<8x80xf32, #tpu.memory_space<vmem>>, vector<8x16xf32>,
    %c0_62 = arith.constant 0 : index
    %c48 = arith.constant 48 : index
    %100 = vector.load %arg19[%c0_62, %c48] : memref<8x80xf32, #tpu.memory_space<vmem>>, vector<8x16xf32>
    tpu.vector_store %arg19[%c0_62, %c48], %59 {strides = array<i32>} : memref<8x80xf32, #tpu.memory_space<vmem>>, vector<8x16xf32>,
    %c0_63 = arith.constant 0 : index
    %c64 = arith.constant 64 : index
    %101 = vector.load %arg19[%c0_63, %c64] : memref<8x80xf32, #tpu.memory_space<vmem>>, vector<8x16xf32>
    tpu.vector_store %arg19[%c0_63, %c64], %84 {strides = array<i32>} : memref<8x80xf32, #tpu.memory_space<vmem>>, vector<8x16xf32>,
    return
  }
  func.func @transform_0(%arg0: i32) -> (i32, i32) {
    %c0_i32 = arith.constant 0 : i32
    %c0_i32_0 = arith.constant 0 : i32
    return %arg0, %c0_i32 : i32, i32
  }
  func.func @transform_1(%arg0: i32) -> (i32, i32) {
    %c0_i32 = arith.constant 0 : i32
    %c0_i32_0 = arith.constant 0 : i32
    return %arg0, %c0_i32 : i32, i32
  }
  func.func @transform_2(%arg0: i32) -> (i32, i32) {
    %c0_i32 = arith.constant 0 : i32
    %c0_i32_0 = arith.constant 0 : i32
    %c0_i32_1 = arith.constant 0 : i32
    return %c0_i32, %c0_i32_0 : i32, i32
  }
  func.func @transform_3(%arg0: i32) -> (i32, i32) {
    %c0_i32 = arith.constant 0 : i32
    %c0_i32_0 = arith.constant 0 : i32
    %c0_i32_1 = arith.constant 0 : i32
    return %c0_i32, %c0_i32_0 : i32, i32
  }
  func.func @transform_4(%arg0: i32) -> (i32, i32) {
    %c0_i32 = arith.constant 0 : i32
    %c0_i32_0 = arith.constant 0 : i32
    %c0_i32_1 = arith.constant 0 : i32
    return %c0_i32, %c0_i32_0 : i32, i32
  }
  func.func @transform_5(%arg0: i32) -> (i32, i32) {
    %c0_i32 = arith.constant 0 : i32
    %c0_i32_0 = arith.constant 0 : i32
    %c0_i32_1 = arith.constant 0 : i32
    return %c0_i32, %c0_i32_0 : i32, i32
  }
  func.func @transform_6(%arg0: i32) -> (i32, i32) {
    %c0_i32 = arith.constant 0 : i32
    %c0_i32_0 = arith.constant 0 : i32
    %c0_i32_1 = arith.constant 0 : i32
    return %c0_i32, %c0_i32_0 : i32, i32
  }
  func.func @transform_7(%arg0: i32) -> (i32, i32) {
    %c0_i32 = arith.constant 0 : i32
    %c0_i32_0 = arith.constant 0 : i32
    %c0_i32_1 = arith.constant 0 : i32
    return %c0_i32, %c0_i32_0 : i32, i32
  }
  func.func @transform_8(%arg0: i32) -> (i32, i32) {
    %c0_i32 = arith.constant 0 : i32
    %c0_i32_0 = arith.constant 0 : i32
    %c0_i32_1 = arith.constant 0 : i32
    return %c0_i32, %c0_i32_0 : i32, i32
  }
  func.func @transform_9(%arg0: i32) -> (i32, i32) {
    %c0_i32 = arith.constant 0 : i32
    %c0_i32_0 = arith.constant 0 : i32
    %c0_i32_1 = arith.constant 0 : i32
    return %c0_i32, %c0_i32_0 : i32, i32
  }
  func.func @transform_10(%arg0: i32) -> (i32, i32) {
    %c0_i32 = arith.constant 0 : i32
    %c0_i32_0 = arith.constant 0 : i32
    %c0_i32_1 = arith.constant 0 : i32
    return %c0_i32, %c0_i32_0 : i32, i32
  }
  func.func @transform_11(%arg0: i32) -> (i32, i32) {
    %c0_i32 = arith.constant 0 : i32
    %c0_i32_0 = arith.constant 0 : i32
    %c0_i32_1 = arith.constant 0 : i32
    return %c0_i32, %c0_i32_0 : i32, i32
  }
  func.func @transform_12(%arg0: i32) -> (i32, i32) {
    %c0_i32 = arith.constant 0 : i32
    %c0_i32_0 = arith.constant 0 : i32
    %c0_i32_1 = arith.constant 0 : i32
    return %c0_i32, %c0_i32_0 : i32, i32
  }
  func.func @transform_13(%arg0: i32) -> (i32, i32) {
    %c0_i32 = arith.constant 0 : i32
    %c0_i32_0 = arith.constant 0 : i32
    %c0_i32_1 = arith.constant 0 : i32
    return %c0_i32, %c0_i32_0 : i32, i32
  }
  func.func @transform_14(%arg0: i32) -> (i32, i32) {
    %c0_i32 = arith.constant 0 : i32
    %c0_i32_0 = arith.constant 0 : i32
    return %arg0, %c0_i32 : i32, i32
  }
  func.func @transform_15(%arg0: i32) -> (i32, i32) {
    %c0_i32 = arith.constant 0 : i32
    %c0_i32_0 = arith.constant 0 : i32
    return %arg0, %c0_i32 : i32, i32
  }
  func.func @transform_16(%arg0: i32) -> (i32, i32) {
    %c0_i32 = arith.constant 0 : i32
    %c0_i32_0 = arith.constant 0 : i32
    %c0_i32_1 = arith.constant 0 : i32
    return %c0_i32, %c0_i32_0 : i32, i32
  }
  func.func @transform_17(%arg0: i32) -> (i32, i32) {
    %c0_i32 = arith.constant 0 : i32
    %c0_i32_0 = arith.constant 0 : i32
    %c0_i32_1 = arith.constant 0 : i32
    return %c0_i32, %c0_i32_0 : i32, i32
  }
  func.func @transform_18(%arg0: i32) -> (i32, i32) {
    %c0_i32 = arith.constant 0 : i32
    %c0_i32_0 = arith.constant 0 : i32
    return %arg0, %c0_i32 : i32, i32
  }
  func.func @transform_19(%arg0: i32) -> (i32, i32) {
    %c0_i32 = arith.constant 0 : i32
    %c0_i32_0 = arith.constant 0 : i32
    return %arg0, %c0_i32 : i32, i32
  }
}

</mosaic_0001>

<bundles_post_ra>
// kernel: etm_forward.3
= control target key start
LH: loop header
LB: loop body
LE: loop exit
PB: predicated region body
PF: predicated region fallthrough
CT: control target
= control target key end

     0   :  { %v782_v0 = vmov 0.0   ;;  %vm783_vm0 = vmmov 0   ;;  %vm112_vm2 = vcmask 523264   ;;  %vm181_vm3 = vcmask 261120   ;;  %s785_s26 = smov 112   ;;  %s1019_s2 = inlined_call_operand.vmem [shape: bf16[64,32], index: 2, kind: input, shape index: {}]   ;;  %s1020_s0 = inlined_call_operand.vmem [shape: f32[8,64], index: 0, kind: input, shape index: {}]   ;;  %s1021_s4 = inlined_call_operand.vmem [shape: bf16[32,16], index: 4, kind: input, shape index: {}]   ;;  %s1022_s6 = inlined_call_operand.vmem [shape: bf16[48,32], index: 6, kind: input, shape index: {}]   ;;  %s1023_s1 = inlined_call_operand.vmem [shape: f32[8,48], index: 1, kind: input, shape index: {}]   ;;  %s1024_s3 = inlined_call_operand.vmem [shape: f32[1,32], index: 3, kind: input, shape index: {}]   ;;  %s1025_s10 = inlined_call_operand.vmem [shape: bf16[16,32], index: 10, kind: input, shape index: {}]   ;;  %s1026_s8 = inlined_call_operand.vmem [shape: bf16[32,16], index: 8, kind: input, shape index: {}]   ;;  %s1027_s14 = inlined_call_operand.vmem [shape: f32[8,16], index: 14, kind: input, shape index: {}]   ;;  %s1028_s5 = inlined_call_operand.vmem [shape: f32[1,16], index: 5, kind: input, shape index: {}]   ;;  %s1029_s7 = inlined_call_operand.vmem [shape: f32[1,32], index: 7, kind: input, shape index: {}]   ;;  %s1030_s12 = inlined_call_operand.vmem [shape: bf16[16,32], index: 12, kind: input, shape index: {}]   ;;  %s1031_s15 = inlined_call_operand.vmem [shape: f32[8,16], index: 15, kind: input, shape index: {}]   ;;  %s1032_s11 = inlined_call_operand.vmem [shape: f32[1,32], index: 11, kind: input, shape index: {}]   ;;  %s1033_s18 = inlined_call_operand.vmem [shape: f32[8,80], index: 18, kind: output, shape index: {0}]   ;;  %s1034_s9 = inlined_call_operand.vmem [shape: f32[1,16], index: 9, kind: input, shape index: {}]   ;;  %s1035_s13 = inlined_call_operand.vmem [shape: f32[1,32], index: 13, kind: input, shape index: {}]   ;;  %s1036_s16 = inlined_call_operand.vmem [shape: bf16[16,112], index: 16, kind: input, shape index: {}]   ;;  %s1037_s17 = inlined_call_operand.vmem [shape: f32[1,112], index: 17, kind: input, shape index: {}]   ;;  %s1038_s19 = inlined_call_operand.vmem [shape: f32[8,112], index: 19, kind: output, shape index: {1}]  }
   0x1   :  { %1042 = sst [smem:[#allocation2_spill]] %s1019_s2  ;;  %692 = vmatprep.subr.bf16.mxu0 %v782_v0  ;;  %700 = vmatprep.mubr.msk.bf16.mxu0 %vm783_vm0, %v782_v0  ;;  %v226_v17 = vld [vmem:[%s1023_s1] sm:$0xff]  ;;  %vm268_vm5 = vcmask 392192   ;;  %v765_v40 = vld [vmem:[%s1026_s8 + $0x8] sm:$0xff]   ;;  %vm397_vm6 = vcmask 130048   ;;  %vm612_vm7 = vcmask 261248  }
   0x2   :  { %1043 = sst [smem:[#allocation3_spill]] %s1020_s0  ;;  %s1046_s20 = sld [smem:[#allocation2_spill]]  ;;  %704 = vmatprep.subr.bf16.mxu1 %v782_v0  ;;  %708 = vmatprep.mubr.msk.bf16.mxu1 %vm783_vm0, %v782_v0  ;;  %v227_v18 = vadd.f32 1.0, %v226_v17  ;;  %v640_v19 = vld [vmem:[%s1024_s3] ss:$0 sm:$0xff]  ;;  %v230_v21 = vmul.f32 -0.5, %v226_v17 }
   0x3   :  { %1044 = sst [smem:[#allocation4_spill]] %s1021_s4  ;;  %s1047_s23 = sld [smem:[#allocation3_spill]]  ;;  %v233_v31 = vand.u32 2147483647, %v226_v17  ;;  %v763_v38 = vld [vmem:[%s1025_s10] sm:$0xff]   ;;  %vm618_vm8 = vcmask 392448  }
   0x4   :  { %1045 = sst [smem:[#allocation5_spill]] %s1022_s6  ;;  %s1048_s6 = sld [smem:[#allocation4_spill]]  ;;  %v231_v28 = vadd.f32 1.0, %v230_v21  ;;  %v764_v39 = vld [vmem:[%s1026_s8] sm:$0xff]   ;;  %vm624_vm9 = vcmask 523648   ;;  %vm630_vm10 = vcmask 654848  }
   0x5   :  { %s1049_s24 = sld [smem:[#allocation5_spill]]  ;;  %vm234_vm4 = vcmp.lt.f32.partialorder %v233_v31, 0.0004427343  ;;  %v507_v41 = vld [vmem:[%s1027_s14] sm:$0xff]  ;;  %s784_s10 = smov 16   ;;  %vm609_vm11 = vcmask 916480  }
   0x6   :  { %v232_v34 = vmul.f32 %v231_v28, %v226_v17  ;;  %509 = vrot.lane.b32.xlu0 %v507_v41, %s784_s10  ;;  %v646_v42 = vld [vmem:[%s1028_s5] ss:$0 sm:$0xff] }
   0x7   :  { %v650_v50 = vld [vmem:[%s1029_s7] ss:$0 sm:$0xff] }
   0x8   :  { %v754_v1 = vld [vmem:[%s1046_s20] sm:$0xff]   ;;  %v755_v2 = vld [vmem:[%s1046_s20 + $0x8] sm:$0xff]   ;;  %v756_v6 = vld [vmem:[%s1046_s20 + $0x10] sm:$0xff]  }
   0x9   :  { %693 = vmatpush3.bf16.msra.mxu0 %v754_v1  ;;  %v62_v3 = vld [vmem:[%s1047_s23] sm:$0xff]  ;;  %v757_v8 = vld [vmem:[%s1046_s20 + $0x18] sm:$0xff]  }
   0xa   :  { %694 = vmatprep.subr.bf16.mxu0 %v782_v0  ;;  %v63_v4 = vadd.f32 1.0, %v62_v3  ;;  %v758_v5 = vld [vmem:[%s1048_s6] sm:$0xff]   ;;  %v66_v7 = vmul.f32 -0.5, %v62_v3  ;;  %v69_v10 = vand.u32 2147483647, %v62_v3  ;;  %v759_v16 = vld [vmem:[%s1048_s6 + $0x8] sm:$0xff]  }
   0xb   :  { %705 = vmatpush3.bf16.msra.mxu1 %v758_v5  ;;  %v760_v27 = vld [vmem:[%s1049_s24] sm:$0xff]   ;;  %v761_v32 = vld [vmem:[%s1049_s24 + $0x8] sm:$0xff]   ;;  %v762_v35 = vld [vmem:[%s1049_s24 + $0x10] sm:$0xff]  }
   0xc   :  { %768 = vlog2.f32 %v63_v4  ;;  %706 = vmatprep.subr.bf16.mxu1 %v782_v0  ;;  %v67_v9 = vadd.f32 1.0, %v66_v7  ;;  %vm70_vm1 = vcmp.lt.f32.partialorder %v69_v10, 0.0004427343  ;;  %v766_v58 = vld [vmem:[%s1030_s12] sm:$0xff]  }
   0xd   :  { %695 = vmatpush3.bf16.msra.mxu0 %v755_v2  ;;  %770 = vlog2.f32 %v227_v18  ;;  %v521_v59 = vld [vmem:[%s1031_s15] sm:$0xff] }
   0xe   :  { %696 = vmatprep.subr.bf16.mxu0 %v782_v0  ;;  %v68_v11 = vmul.f32 %v67_v9, %v62_v3  ;;  %523 = vrot.lane.b32.xlu0 %v521_v59, %s784_s10  ;;  %v659_v60 = vld [vmem:[%s1032_s11] ss:$0 sm:$0xff]  ;;  %s787_s10 = smov 64  }
   0xf   :  { %707 = vmatpush3.bf16.msra.mxu1 %v759_v16  ;;  %v655_v5 = vld [vmem:[%s1034_s9] ss:$0 sm:$0xff]  ;;  %s786_s9 = smov 32  }
  0x10   :  { %712 = vmatprep.subr.bf16.mxu1 %v782_v0  ;;  %v662_v16 = vld [vmem:[%s1035_s13] ss:$0 sm:$0xff] }
  0x11   :  { %697 = vmatpush3.bf16.msra.mxu0 %v756_v6  ;;  %v767_v41 = vld [vmem:[%s1036_s16] sm:$0xff]  }
  0x12   :  { %698 = vmatprep.subr.bf16.mxu0 %v782_v0 }
  0x15   :  { %699 = vmatpush3.bf16.msra.mxu0 %v757_v8 }
  0x16   :  { %722 = vmatprep.subr.bf16.mxu0 %v782_v0  ;;  %v769_v12 = vpop.eup %768 }
  0x17   :  { %v65_v13 = vmul.f32 0.6931472, %v769_v12  ;;  %v771_v29 = vpop.eup %770 }
  0x18   :  { %v229_v33 = vmul.f32 0.6931472, %v771_v29 }
  0x19   :  { %v71_v14 = vsel %vm70_vm1, %v68_v11, %v65_v13 }
  0x1a   :  { %v72_v15 = vpack.c.bf16 %v71_v14, %v71_v14  ;;  %v235_v36 = vsel %vm234_vm4, %v232_v34, %v229_v33 }
  0x1b   :  { %v236_v37 = vpack.c.bf16 %v235_v36, %v235_v36 }
  0x1c   :  { %701 = vmatmul.mubr.msk.bf16.vlgmr.msra.gmra.mrb[0].mxu0 %vm112_vm2, %v72_v15 }
  0x1d   :  { %726 = vmatprep.mubr.msk.bf16.mxu0 %vm783_vm0, %v782_v0  ;;  %723 = vmatpush3.bf16.msra.mxu0 %v764_v39 }
  0x1e   :  { %724 = vmatprep.subr.bf16.mxu0 %v782_v0 }
  0x21   :  { %725 = vmatpush3.bf16.msra.mxu0 %v765_v40 }
  0x22   :  { %736 = vmatprep.subr.bf16.mxu0 %v782_v0 }
  0x78   :  { %v510_v13 = vpop.permute.xlu0 %509 }
  0xef   :  { %v150_v20 = vpop.f32.mrb[0].mxu0 }
  0xf0   :  { %v151_v22 = vadd.f32 %v640_v19, %v150_v20  ;;  %v702_v23 = vpop.f32.mrb[1].mxu0 }
  0xf1   :  { %v153_v24 = vpop.f32.mrb[2].mxu0 }
  0xf2   :  { %v156_v25 = vmax.f32 %v151_v22, 0.0  ;;  %v703_v26 = vpop.f32.mrb[3].mxu0 }
  0xf4   :  { %v157_v30 = vpack.c.bf16 %v156_v25, %v156_v25  ;;  %v524_v25 = vpop.permute.xlu0 %523 }
  0xf6   :  { %709 = vmatmul.mubr.msk.bf16.vlgmr.msra.gmra.mrb[0].mxu1 %vm181_vm3, %v157_v30 }
  0xf7   :  { %713 = vmatpush3.bf16.msra.mxu1 %v760_v27  ;;  %718 = vmatprep.mubr.msk.bf16.mxu1 %vm783_vm0, %v782_v0 }
  0xf8   :  { %714 = vmatprep.subr.bf16.mxu1 %v782_v0 }
  0xfb   :  { %715 = vmatpush3.bf16.msra.mxu1 %v761_v32 }
  0xfc   :  { %716 = vmatprep.subr.bf16.mxu1 %v782_v0 }
  0xff   :  { %717 = vmatpush3.bf16.msra.mxu1 %v762_v35 }
 0x100   :  { %730 = vmatprep.subr.bf16.mxu1 %v782_v0 }
 0x102   :  { %719 = vmatmul.mubr.msk.bf16.vlgmr.msra.gmra.mrb[4].mxu1 %vm268_vm5, %v236_v37 }
 0x103   :  { %732 = vmatprep.mubr.msk.bf16.mxu1 %vm783_vm0, %v782_v0  ;;  %731 = vmatpush3.bf16.msra.mxu1 %v763_v38 }
 0x104   :  { %742 = vmatprep.subr.bf16.mxu1 %v782_v0 }
 0x1c9   :  { %v219_v43 = vpop.f32.mrb[0].mxu1 }
 0x1ca   :  { %v220_v44 = vadd.f32 %v646_v42, %v219_v43  ;;  %v710_v45 = vpop.f32.mrb[1].mxu1 }
 0x1cb   :  { %v222_v46 = vpop.f32.mrb[2].mxu1 }
 0x1cc   :  { %v225_v47 = vmax.f32 %v220_v44, 0.0  ;;  %v711_v48 = vpop.f32.mrb[3].mxu1 }
 0x1ce   :  { %v381_v49 = vpack.c.bf16 %v225_v47, %v225_v47 }
 0x1d0   :  { %733 = vmatmul.mubr.msk.bf16.vlgmr.msra.gmra.mrb[8].mxu1 %vm397_vm6, %v381_v49 }
 0x1d1   :  { %744 = vmatprep.mubr.msk.bf16.mxu1 %vm783_vm0, %v782_v0  ;;  %743 = vmatpush3.bf16.msra.mxu1 %v767_v41 }
 0x1d5   :  { %v306_v51 = vpop.f32.mrb[4].mxu1 }
 0x1d6   :  { %v307_v52 = vadd.f32 %v650_v50, %v306_v51  ;;  %v720_v53 = vpop.f32.mrb[5].mxu1 }
 0x1d7   :  { %v309_v54 = vpop.f32.mrb[6].mxu1 }
 0x1d8   :  { %v312_v55 = vmax.f32 %v307_v52, 0.0  ;;  %v721_v56 = vpop.f32.mrb[7].mxu1  ;;  %v670_v54 = vld [vmem:[%s1037_s17] ss:$0 sm:$0xff] }
 0x1da   :  { %v313_v57 = vpack.c.bf16 %v312_v55, %v312_v55 }
 0x1dc   :  { %727 = vmatmul.mubr.msk.bf16.vlgmr.msra.gmra.mrb[4].mxu0 %vm181_vm3, %v313_v57 }
 0x1dd   :  { %738 = vmatprep.mubr.msk.bf16.mxu0 %vm783_vm0, %v782_v0  ;;  %737 = vmatpush3.bf16.msra.mxu0 %v766_v58 }
 0x2a3   :  { %v435_v61 = vpop.f32.mrb[8].mxu1 }
 0x2a4   :  { %v436_v62 = vadd.f32 %v659_v60, %v435_v61  ;;  %v734_v63 = vpop.f32.mrb[9].mxu1 }
 0x2a5   :  { %v438_v1 = vpop.f32.mrb[10].mxu1 }
 0x2a6   :  { %v665_v0 = vclamps-f32 %v436_v62, 4.0  ;;  %611 = vst.msk [vmem:[%s1033_s18] sm:$0xff] %vm397_vm6, %v436_v62  ;;  %v735_v2 = vpop.f32.mrb[11].mxu1 }
 0x2a8   :  { %v504_v3 = vmul.f32 0.5, %v665_v0  ;;  %613 = vst.msk [vmem:[%s1033_s18] sm:$0xff] %vm612_vm7, %v665_v0 }
 0x2aa   :  { %v505_v4 = vmul.f32 1.442695, %v504_v3 }
 0x2ac   :  { %772 = vpow2.f32 %v505_v4 }
 0x2af   :  { %v374_v6 = vpop.f32.mrb[4].mxu0 }
 0x2b0   :  { %v375_v7 = vadd.f32 %v655_v5, %v374_v6  ;;  %v728_v8 = vpop.f32.mrb[5].mxu0 }
 0x2b1   :  { %v377_v9 = vpop.f32.mrb[6].mxu0 }
 0x2b2   :  { %v380_v10 = vmax.f32 %v375_v7, 0.0  ;;  %v729_v11 = vpop.f32.mrb[7].mxu0 }
 0x2b4   :  { %v441_v12 = vpack.c.bf16 %v380_v10, %v380_v10 }
 0x2b6   :  { %v773_v14 = vpop.eup %772  ;;  %739 = vmatmul.mubr.msk.bf16.vlgmr.msra.gmra.mrb[8].mxu0 %vm397_vm6, %v441_v12 }
 0x2b7   :  { %v512_v15 = vmul.f32 %v773_v14, %v510_v13 }
 0x2b9   :  { %514 = vrot.lane.b32.xlu1 %v512_v15, %s785_s26 }
 0x32b   :  { %v515_v28 = vpop.permute.xlu1 %514 }
 0x32c   :  { %v517_v30 = vadd.f32 %v515_v28, %v436_v62 }
 0x389   :  { %v494_v17 = vpop.f32.mrb[8].mxu0 }
 0x38a   :  { %v495_v18 = vadd.f32 %v662_v16, %v494_v17  ;;  %v740_v19 = vpop.f32.mrb[9].mxu0 }
 0x38b   :  { %v497_v20 = vpop.f32.mrb[10].mxu0 }
 0x38c   :  { %v666_v21 = vclamps-f32 %v495_v18, 4.0  ;;  %v741_v22 = vpop.f32.mrb[11].mxu0 }
 0x38e   :  { %v518_v23 = vmul.f32 0.5, %v666_v21 }
 0x390   :  { %v519_v24 = vmul.f32 1.442695, %v518_v23 }
 0x392   :  { %774 = vpow2.f32 %v519_v24 }
 0x39c   :  { %v775_v26 = vpop.eup %774 }
 0x39d   :  { %v526_v27 = vmul.f32 %v775_v26, %v524_v25 }
 0x39f   :  { %528 = vrot.lane.b32.xlu1 %v526_v27, %s785_s26 }
 0x411   :  { %v529_v29 = vpop.permute.xlu1 %528 }
 0x412   :  { %v531_v31 = vadd.f32 %v529_v29, %v495_v18 }
 0x414   :  { %v532_v32 = vadd.f32 %v531_v31, %v517_v30 }
 0x416   :  { %v533_v33 = vmul.f32 0.5, %v532_v32 }
 0x418   :  { %v534_v34 = vsel %vm397_vm6, %v533_v33, -inf }
 0x419   :  { %535 = vmax.xlane.f32.xlu0 %v534_v34 }
 0x42f   :  { %615 = vrot.lane.b32.xlu0 %v495_v18, %s786_s9 }
 0x4a6   :  { %v536_v35 = vpop.xlane.xlu0 %535 }
 0x4a7   :  { %v537_v36 = vsub.f32 %v533_v33, %v536_v35 }
 0x4a9   :  { %v538_v37 = vmul.f32 1.442695, %v537_v36 }
 0x4aa   :  { %v616_v38 = vpop.permute.xlu0 %615 }
 0x4ab   :  { %776 = vpow2.f32 %v538_v37  ;;  %619 = vst.msk [vmem:[%s1033_s18] sm:$0xff] %vm618_vm8, %v616_v38 }
 0x4b5   :  { %v777_v39 = vpop.eup %776 }
 0x4b6   :  { %v540_v40 = vsel %vm397_vm6, %v777_v39, 0.0 }
 0x4b7   :  { %541 = vadd.xlane.f32.xlu1 %v540_v40 }
 0x4c8   :  { %621 = vrot.lane.b32.xlu1 %v666_v21, %s786_s9 }
 0x544   :  { %v542_v42 = vpop.xlane.xlu1 %541 }
 0x545   :  { %778 = vrcp.f32 %v542_v42 }
 0x548   :  { %v622_v43 = vpop.permute.xlu1 %621 }
 0x549   :  { %625 = vst.msk [vmem:[%s1033_s18] sm:$0xff] %vm624_vm9, %v622_v43 }
 0x54f   :  { %v779_v44 = vpop.eup %778 }
 0x550   :  { %v544_v45 = vmul.f32 %v779_v44, %v777_v39 }
 0x552   :  { %627 = vrot.lane.b32.xlu0 %v544_v45, %s787_s10  ;;  %v545_v46 = vpack.c.bf16 %v544_v45, %v544_v45 }
 0x554   :  { %745 = vmatmul.mubr.msk.bf16.vlgmr.msra.gmra.mrb[12].mxu1 %vm397_vm6, %v545_v46 }
 0x5c4   :  { %v628_v47 = vpop.permute.xlu0 %627 }
 0x5c5   :  { %631 = vst.msk [vmem:[%s1033_s18] sm:$0xff] %vm630_vm10, %v628_v47 }
 0x627   :  { %v591_v48 = vpop.f32.mrb[12].mxu1 }
 0x628   :  { %v669_v49 = vclamps-f32 %v591_v48, 10.0  ;;  %v746_v50 = vpop.f32.mrb[13].mxu1 }
 0x629   :  { %v594_v51 = vpop.f32.mrb[14].mxu1 }
 0x62a   :  { %v600_v52 = vmul.f32 1.442695, %v669_v49  ;;  %v747_v53 = vpop.f32.mrb[15].mxu1 }
 0x62c   :  { %780 = vpow2.f32 %v600_v52 }
 0x636   :  { %v781_v55 = vpop.eup %780 }
 0x637   :  { %v608_v56 = vmul.f32 %v781_v55, %v670_v54 }
 0x639   :  { %610 = vst.msk [vmem:[%s1038_s19] sm:$0xff] %vm609_vm11, %v608_v56 }

</bundles_post_ra>
